<compile_context>
chip_gen: v7x
topology: tpu7x:2x2x1
jax: 0.10.0
libtpu: 0.0.40
codegen_flags: <defaults>
</compile_context>

<pallas_src>
import functools

import jax
import jax.numpy as jnp
import numpy as np
from jax.experimental import pallas as pl
from jax.experimental.pallas import tpu as pltpu


def _round_up(x, m):
    return ((x + m - 1) // m) * m


def dfm_kernel(params_ref, hr_ref, lr_ref, out_ref, *, K, c_hr_valid):
    # params_ref: (K+4,) f32 in SMEM
    # hr_ref: (TB, C_HR_p, HW_p)   lr_ref/out_ref: (TB, C_LR_p, HW_p)
    TB = lr_ref.shape[0]
    C_LR = lr_ref.shape[1]
    C_HR = hr_ref.shape[1]

    w1_0 = params_ref[0]        # conv1 weight for the LR channel of the concat
    b1 = params_ref[K + 1]      # conv1 bias
    w2 = params_ref[K + 2]      # conv2 weight (1x1 conv 1->1)
    b2 = params_ref[K + 3]      # conv2 bias

    for t in range(TB):                      # static, unrolled (TB is small)
        hr = hr_ref[t]                       # (C_HR, HW) f32
        lr = lr_ref[t]                       # (C_LR, HW) f32

        # Correlation over the flattened spatial dim.  Output is only
        # (C_LR, C_HR) so this is the cheap matmul; HIGHEST keeps the top-K
        # ordering identical to the exact-f32 reference.
        corr = jax.lax.dot_general(
            lr, hr, dimension_numbers=(((1,), (1,)), ((), ())),
            preferred_element_type=jnp.float32,
            precision=jax.lax.Precision.HIGHEST)                 # (C_LR, C_HR)

        col_ids = jax.lax.broadcasted_iota(jnp.int32, (C_LR, C_HR), 1)
        if c_hr_valid < C_HR:
            # never select zero-padded HR channels
            corr = jnp.where(col_ids < c_hr_valid, corr, -jnp.inf)

        # Iterative top-K (descending values, ties -> lowest index), matching
        # jax.lax.top_k / torch.topk ordering.  Only builds tiny (C_LR, C_HR)
        # one-hot matrices; no per-k pass over the HR slab.
        onehots = []
        work = corr
        for _ in range(K):
            mval = jnp.max(work, axis=1, keepdims=True)
            idx = jnp.min(jnp.where(work == mval, col_ids, C_HR),
                          axis=1, keepdims=True)
            hit = col_ids == idx
            onehots.append(hit.astype(jnp.float32))
            work = jnp.where(hit, -jnp.inf, work)

        # Single stacked gather: (K*C_LR, C_HR) @ (C_HR, HW) on the MXU.
        # HR is split into bf16 hi/lo parts so two default-precision bf16
        # passes reproduce the exact f32 gather (one-hot is exact in bf16).
        sel_mat = jnp.concatenate(onehots, axis=0).astype(jnp.bfloat16)
        hr_hi = hr.astype(jnp.bfloat16)
        hr_lo = (hr - hr_hi.astype(jnp.float32)).astype(jnp.bfloat16)
        dn = (((1,), (0,)), ((), ()))
        sel_all = (
            jax.lax.dot_general(sel_mat, hr_hi, dimension_numbers=dn,
                                preferred_element_type=jnp.float32)
            + jax.lax.dot_general(sel_mat, hr_lo, dimension_numbers=dn,
                                  preferred_element_type=jnp.float32)
        )                                                    # (K*C_LR, HW) f32

        # 1x1 conv over the concatenated [LR, selected...] channels, then
        # LeakyReLU(0.1), second 1x1 conv, sigmoid gating.
        blk = sel_all[0:C_LR, :]
        conv1 = w1_0 * lr + b1 + params_ref[1] * blk
        maxsel = blk
        for k in range(1, K):
            blk = sel_all[k * C_LR:(k + 1) * C_LR, :]        # static slice
            conv1 = conv1 + params_ref[1 + k] * blk
            maxsel = jnp.maximum(maxsel, blk)

        lrelu = jnp.where(conv1 >= 0, conv1, 0.1 * conv1)    # LeakyReLU(0.1)
        fusion = w2 * lrelu + b2                             # second 1x1 conv
        # sigmoid = 1/(1+exp(-x)); exp + approx reciprocal both run on the EUP
        weight = pl.reciprocal(1.0 + jnp.exp(-maxsel), approx=True)
        out_ref[t] = fusion * (1.0 + weight)                 # fusion + w*fusion


def dfm_forward(HR, LR, w1, b1, w2, b2):
    """HR: (B, C_HR, H, W), LR: (B, C_LR, H, W); returns (B, C_LR, H, W)."""
    B, C_HR, H, W = HR.shape
    _, C_LR, _, _ = LR.shape
    HW = H * W
    K = int(w1.size) - 1

    # Pad to hardware-friendly shapes: lanes (HW) to 128, sublanes (C) to 8.
    HW_p = _round_up(HW, 128)
    C_HR_p = _round_up(C_HR, 8)
    C_LR_p = _round_up(C_LR, 8)

    hr_flat = HR.reshape(B, C_HR, HW).astype(jnp.float32)
    lr_flat = LR.reshape(B, C_LR, HW).astype(jnp.float32)
    if (C_HR_p, HW_p) != (C_HR, HW):
        hr_flat = jnp.pad(hr_flat, ((0, 0), (0, C_HR_p - C_HR), (0, HW_p - HW)))
    if (C_LR_p, HW_p) != (C_LR, HW):
        lr_flat = jnp.pad(lr_flat, ((0, 0), (0, C_LR_p - C_LR), (0, HW_p - HW)))

    params = jnp.concatenate(
        [w1.reshape(-1), b1.reshape(-1), w2.reshape(-1), b2.reshape(-1)]
    ).astype(jnp.float32)                                    # (K + 4,)

    # ---- choose how many batch elements each grid step processes (TB) ------
    # Approximate per-batch VMEM: double-buffered HR/LR/out slabs plus live
    # f32 intermediates (sel_all, conv1, maxsel) and bf16 HR hi/lo copies.
    bytes_per_batch = 4 * HW_p * (
        2 * (C_HR_p + 2 * C_LR_p)     # double-buffered in/out blocks
        + (K + 3) * C_LR_p            # sel_all + conv1 + maxsel (+slack)
        + C_HR_p)                     # bf16 hi/lo copies of HR
    vmem_budget = 16 * 1024 * 1024    # stays well under v7x scoped default
    max_tb = min(8, max(1, vmem_budget // max(1, bytes_per_batch)))

    tb = 1
    for cand in range(min(B, max_tb), 0, -1):
        if B % cand == 0:
            tb = cand
            break
    if tb == B and B > 1:
        # keep >= 2 grid steps so the parallel batch axis can be sharded
        # across both TensorCores on v7x
        for cand in range(B // 2, 0, -1):
            if B % cand == 0:
                tb = cand
                break

    grid = (B // tb,)
    out = pl.pallas_call(
        functools.partial(dfm_kernel, K=K, c_hr_valid=C_HR),
        out_shape=jax.ShapeDtypeStruct((B, C_LR_p, HW_p), jnp.float32),
        grid=grid,
        in_specs=[
            pl.BlockSpec(memory_space=pltpu.MemorySpace.SMEM),        # conv params
            pl.BlockSpec((tb, C_HR_p, HW_p), lambda b: (b, 0, 0)),    # HR slab
            pl.BlockSpec((tb, C_LR_p, HW_p), lambda b: (b, 0, 0)),    # LR slab
        ],
        out_specs=pl.BlockSpec((tb, C_LR_p, HW_p), lambda b: (b, 0, 0)),
        compiler_params=pltpu.CompilerParams(
            dimension_semantics=("parallel",)),
    )(params, hr_flat, lr_flat)

    out = out[:, :C_LR, :HW]
    return out.reshape(B, C_LR, H, W)


def dfm_ref(HR, LR, w1, b1, w2, b2, K):
    """Pure-JAX reference replicating the PyTorch forward."""
    B, C_HR, H, W = HR.shape
    _, C_LR, _, _ = LR.shape
    HW = H * W
    hrf = HR.reshape(B, C_HR, HW)
    lrf = LR.reshape(B, C_LR, HW)
    corr = jnp.einsum('bqd,bcd->bqc', lrf, hrf,
                      precision=jax.lax.Precision.HIGHEST)
    _, idx = jax.lax.top_k(corr, K)                                   # (B, C_LR, K)
    sel = jnp.take_along_axis(
        jnp.broadcast_to(hrf[:, None], (B, C_LR, C_HR, HW)),
        idx[..., None], axis=2)                                       # (B, C_LR, K, HW)
    conv1 = w1[0] * lrf + b1[0] + jnp.einsum('k,bqkd->bqd', w1[1:], sel)
    lrelu = jnp.where(conv1 >= 0, conv1, 0.1 * conv1)
    fusion = w2[0] * lrelu + b2[0]
    weight = jax.nn.sigmoid(sel.max(axis=2))
    out = fusion * (1.0 + weight)
    return out.reshape(B, C_LR, H, W)


if __name__ == "__main__":
    # Small deterministic problem: num_cluster=8 -> K=4
    B, C_HR, C_LR, H, W = 2, 16, 8, 16, 16
    num_cluster = 8
    K = num_cluster // 2

    key = jax.random.PRNGKey(0)
    k_hr, k_lr, k_w1, k_b1, k_w2, k_b2 = jax.random.split(key, 6)

    HR = jax.random.normal(k_hr, (B, C_HR, H, W), dtype=jnp.float32)
    LR = jax.random.normal(k_lr, (B, C_LR, H, W), dtype=jnp.float32)

    # conv1: Conv2d(1+K, 1, 1x1) -> weight (1+K,), bias (1,)
    # conv2: Conv2d(1, 1, 1x1)   -> weight (1,),   bias (1,)
    w1 = 0.3 * jax.random.normal(k_w1, (1 + K,), dtype=jnp.float32)
    b1 = 0.1 * jax.random.normal(k_b1, (1,), dtype=jnp.float32)
    w2 = 0.3 * jax.random.normal(k_w2, (1,), dtype=jnp.float32)
    b2 = 0.1 * jax.random.normal(k_b2, (1,), dtype=jnp.float32)

    out = dfm_forward(HR, LR, w1, b1, w2, b2)
    out = jax.block_until_ready(out)

    ref = jax.block_until_ready(dfm_ref(HR, LR, w1, b1, w2, b2, K))
    np.testing.assert_allclose(np.asarray(out), np.asarray(ref),
                               rtol=2e-3, atol=2e-3)
    print("KERNEL_OK")
</pallas_src>

<mosaic_0001>
module attributes {stable_mosaic.version = 11 : i64} {
  func.func @dfm_kernel(%arg0: i32, %arg1: memref<8xf32, #tpu.memory_space<smem>>, %arg2: memref<1x16x256xf32, #tpu.memory_space<vmem>>, %arg3: memref<1x8x256xf32, #tpu.memory_space<vmem>>, %arg4: memref<1x8x256xf32, #tpu.memory_space<vmem>>) attributes {dimension_semantics = [#tpu.dimension_semantics<parallel>], iteration_bounds = array<i64: 2>, scalar_prefetch = 0 : i64, scratch_operands = 0 : i64, tpu.core_type = #tpu.core_type<tc>, window_params = [{transform_indices = @transform_0, window_bounds = array<i64: 8>}, {transform_indices = @transform_1, window_bounds = array<i64: 1, 16, 256>}, {transform_indices = @transform_2, window_bounds = array<i64: 1, 8, 256>}, {transform_indices = @transform_3, window_bounds = array<i64: 1, 8, 256>}]} {
    %c0 = arith.constant 0 : index
    %0 = memref.load %arg1[%c0] : memref<8xf32, #tpu.memory_space<smem>>
    %c5 = arith.constant 5 : index
    %1 = memref.load %arg1[%c5] : memref<8xf32, #tpu.memory_space<smem>>
    %c6 = arith.constant 6 : index
    %2 = memref.load %arg1[%c6] : memref<8xf32, #tpu.memory_space<smem>>
    %c7 = arith.constant 7 : index
    %3 = memref.load %arg1[%c7] : memref<8xf32, #tpu.memory_space<smem>>
    %c0_0 = arith.constant 0 : index
    %c0_1 = arith.constant 0 : index
    %c0_2 = arith.constant 0 : index
    %4 = vector.load %arg2[%c0_0, %c0_1, %c0_2] : memref<1x16x256xf32, #tpu.memory_space<vmem>>, vector<1x16x256xf32>
    %5 = vector.shape_cast %4 : vector<1x16x256xf32> to vector<16x256xf32>
    %c0_3 = arith.constant 0 : index
    %c0_4 = arith.constant 0 : index
    %c0_5 = arith.constant 0 : index
    %6 = vector.load %arg3[%c0_3, %c0_4, %c0_5] : memref<1x8x256xf32, #tpu.memory_space<vmem>>, vector<1x8x256xf32>
    %7 = vector.shape_cast %6 : vector<1x8x256xf32> to vector<8x256xf32>
    %cst = arith.constant dense<0.000000e+00> : vector<8x16xf32>
    %8 = tpu.matmul %7, %5, %cst {dimension_numbers = #tpu.dot_dimension_numbers<[1], [1], [0], [0], [0, 0, 1, 0], [], []>, precision = #tpu.contract_precision<fp32>} : vector<8x256xf32>, vector<16x256xf32>, vector<8x16xf32> -> vector<8x16xf32>
    %9 = tpu.iota {dimensions = array<i32: 1>} : vector<8x16xi32>
    %cst_6 = arith.constant dense<0xFF800000> : vector<8xf32>
    %10 = vector.multi_reduction <maximumf>, %8, %cst_6 [1] : vector<8x16xf32> to vector<8xf32>
    %11 = vector.shape_cast %10 : vector<8xf32> to vector<8x1xf32>
    %12 = vector.broadcast %11 : vector<8x1xf32> to vector<8x16xf32>
    %13 = arith.cmpf oeq, %8, %12 : vector<8x16xf32>
    %c16_i32 = arith.constant 16 : i32
    %14 = vector.broadcast %c16_i32 : i32 to vector<8x16xi32>
    %15 = arith.select %13, %9, %14 : vector<8x16xi1>, vector<8x16xi32>
    %cst_7 = arith.constant dense<2147483647> : vector<8xi32>
    %16 = vector.multi_reduction <minsi>, %15, %cst_7 [1] : vector<8x16xi32> to vector<8xi32>
    %17 = vector.shape_cast %16 : vector<8xi32> to vector<8x1xi32>
    %18 = vector.broadcast %17 : vector<8x1xi32> to vector<8x16xi32>
    %19 = arith.cmpi eq, %9, %18 : vector<8x16xi32>
    %20 = arith.extui %19 : vector<8x16xi1> to vector<8x16xi32>
    %21 = arith.sitofp %20 : vector<8x16xi32> to vector<8x16xf32>
    %cst_8 = arith.constant 0xFF800000 : f32
    %22 = vector.broadcast %cst_8 : f32 to vector<8x16xf32>
    %23 = arith.select %19, %22, %8 : vector<8x16xi1>, vector<8x16xf32>
    %cst_9 = arith.constant dense<0xFF800000> : vector<8xf32>
    %24 = vector.multi_reduction <maximumf>, %23, %cst_9 [1] : vector<8x16xf32> to vector<8xf32>
    %25 = vector.shape_cast %24 : vector<8xf32> to vector<8x1xf32>
    %26 = vector.broadcast %25 : vector<8x1xf32> to vector<8x16xf32>
    %27 = arith.cmpf oeq, %23, %26 : vector<8x16xf32>
    %c16_i32_10 = arith.constant 16 : i32
    %28 = vector.broadcast %c16_i32_10 : i32 to vector<8x16xi32>
    %29 = arith.select %27, %9, %28 : vector<8x16xi1>, vector<8x16xi32>
    %cst_11 = arith.constant dense<2147483647> : vector<8xi32>
    %30 = vector.multi_reduction <minsi>, %29, %cst_11 [1] : vector<8x16xi32> to vector<8xi32>
    %31 = vector.shape_cast %30 : vector<8xi32> to vector<8x1xi32>
    %32 = vector.broadcast %31 : vector<8x1xi32> to vector<8x16xi32>
    %33 = arith.cmpi eq, %9, %32 : vector<8x16xi32>
    %34 = arith.extui %33 : vector<8x16xi1> to vector<8x16xi32>
    %35 = arith.sitofp %34 : vector<8x16xi32> to vector<8x16xf32>
    %cst_12 = arith.constant 0xFF800000 : f32
    %36 = vector.broadcast %cst_12 : f32 to vector<8x16xf32>
    %37 = arith.select %33, %36, %23 : vector<8x16xi1>, vector<8x16xf32>
    %cst_13 = arith.constant dense<0xFF800000> : vector<8xf32>
    %38 = vector.multi_reduction <maximumf>, %37, %cst_13 [1] : vector<8x16xf32> to vector<8xf32>
    %39 = vector.shape_cast %38 : vector<8xf32> to vector<8x1xf32>
    %40 = vector.broadcast %39 : vector<8x1xf32> to vector<8x16xf32>
    %41 = arith.cmpf oeq, %37, %40 : vector<8x16xf32>
    %c16_i32_14 = arith.constant 16 : i32
    %42 = vector.broadcast %c16_i32_14 : i32 to vector<8x16xi32>
    %43 = arith.select %41, %9, %42 : vector<8x16xi1>, vector<8x16xi32>
    %cst_15 = arith.constant dense<2147483647> : vector<8xi32>
    %44 = vector.multi_reduction <minsi>, %43, %cst_15 [1] : vector<8x16xi32> to vector<8xi32>
    %45 = vector.shape_cast %44 : vector<8xi32> to vector<8x1xi32>
    %46 = vector.broadcast %45 : vector<8x1xi32> to vector<8x16xi32>
    %47 = arith.cmpi eq, %9, %46 : vector<8x16xi32>
    %48 = arith.extui %47 : vector<8x16xi1> to vector<8x16xi32>
    %49 = arith.sitofp %48 : vector<8x16xi32> to vector<8x16xf32>
    %cst_16 = arith.constant 0xFF800000 : f32
    %50 = vector.broadcast %cst_16 : f32 to vector<8x16xf32>
    %51 = arith.select %47, %50, %37 : vector<8x16xi1>, vector<8x16xf32>
    %cst_17 = arith.constant dense<0xFF800000> : vector<8xf32>
    %52 = vector.multi_reduction <maximumf>, %51, %cst_17 [1] : vector<8x16xf32> to vector<8xf32>
    %53 = vector.shape_cast %52 : vector<8xf32> to vector<8x1xf32>
    %54 = vector.broadcast %53 : vector<8x1xf32> to vector<8x16xf32>
    %55 = arith.cmpf oeq, %51, %54 : vector<8x16xf32>
    %c16_i32_18 = arith.constant 16 : i32
    %56 = vector.broadcast %c16_i32_18 : i32 to vector<8x16xi32>
    %57 = arith.select %55, %9, %56 : vector<8x16xi1>, vector<8x16xi32>
    %cst_19 = arith.constant dense<2147483647> : vector<8xi32>
    %58 = vector.multi_reduction <minsi>, %57, %cst_19 [1] : vector<8x16xi32> to vector<8xi32>
    %59 = vector.shape_cast %58 : vector<8xi32> to vector<8x1xi32>
    %60 = vector.broadcast %59 : vector<8x1xi32> to vector<8x16xi32>
    %61 = arith.cmpi eq, %9, %60 : vector<8x16xi32>
    %62 = arith.extui %61 : vector<8x16xi1> to vector<8x16xi32>
    %63 = arith.sitofp %62 : vector<8x16xi32> to vector<8x16xf32>
    %64 = tpu.concatenate %21, %35, %49, %63 in 0 : vector<8x16xf32>, vector<8x16xf32>, vector<8x16xf32>, vector<8x16xf32> -> vector<32x16xf32>
    %65 = arith.truncf %64 : vector<32x16xf32> to vector<32x16xbf16>
    %66 = arith.truncf %5 : vector<16x256xf32> to vector<16x256xbf16>
    %67 = arith.extf %66 : vector<16x256xbf16> to vector<16x256xf32>
    %68 = arith.subf %5, %67 : vector<16x256xf32>
    %69 = arith.truncf %68 : vector<16x256xf32> to vector<16x256xbf16>
    %cst_20 = arith.constant dense<0.000000e+00> : vector<32x256xf32>
    %70 = tpu.matmul %65, %66, %cst_20 {dimension_numbers = #tpu.dot_dimension_numbers<[1], [0], [0], [1], [0, 0, 1, 1], [], []>} : vector<32x16xbf16>, vector<16x256xbf16>, vector<32x256xf32> -> vector<32x256xf32>
    %cst_21 = arith.constant dense<0.000000e+00> : vector<32x256xf32>
    %71 = tpu.matmul %65, %69, %cst_21 {dimension_numbers = #tpu.dot_dimension_numbers<[1], [0], [0], [1], [0, 0, 1, 1], [], []>} : vector<32x16xbf16>, vector<16x256xbf16>, vector<32x256xf32> -> vector<32x256xf32>
    %72 = arith.addf %70, %71 : vector<32x256xf32>
    %73 = vector.extract_strided_slice %72 {offsets = [0, 0], sizes = [8, 256], strides = [1, 1]} : vector<32x256xf32> to vector<8x256xf32>
    %74 = vector.broadcast %0 : f32 to vector<8x256xf32>
    %75 = arith.mulf %74, %7 : vector<8x256xf32>
    %76 = vector.broadcast %1 : f32 to vector<8x256xf32>
    %77 = arith.addf %75, %76 : vector<8x256xf32>
    %c1 = arith.constant 1 : index
    %78 = memref.load %arg1[%c1] : memref<8xf32, #tpu.memory_space<smem>>
    %79 = vector.broadcast %78 : f32 to vector<8x256xf32>
    %80 = arith.mulf %79, %73 : vector<8x256xf32>
    %81 = arith.addf %77, %80 : vector<8x256xf32>
    %82 = vector.extract_strided_slice %72 {offsets = [8, 0], sizes = [8, 256], strides = [1, 1]} : vector<32x256xf32> to vector<8x256xf32>
    %c2 = arith.constant 2 : index
    %83 = memref.load %arg1[%c2] : memref<8xf32, #tpu.memory_space<smem>>
    %84 = vector.broadcast %83 : f32 to vector<8x256xf32>
    %85 = arith.mulf %84, %82 : vector<8x256xf32>
    %86 = arith.addf %81, %85 : vector<8x256xf32>
    %87 = arith.maximumf %73, %82 : vector<8x256xf32>
    %88 = vector.extract_strided_slice %72 {offsets = [16, 0], sizes = [8, 256], strides = [1, 1]} : vector<32x256xf32> to vector<8x256xf32>
    %c3 = arith.constant 3 : index
    %89 = memref.load %arg1[%c3] : memref<8xf32, #tpu.memory_space<smem>>
    %90 = vector.broadcast %89 : f32 to vector<8x256xf32>
    %91 = arith.mulf %90, %88 : vector<8x256xf32>
    %92 = arith.addf %86, %91 : vector<8x256xf32>
    %93 = arith.maximumf %87, %88 : vector<8x256xf32>
    %94 = vector.extract_strided_slice %72 {offsets = [24, 0], sizes = [8, 256], strides = [1, 1]} : vector<32x256xf32> to vector<8x256xf32>
    %c4 = arith.constant 4 : index
    %95 = memref.load %arg1[%c4] : memref<8xf32, #tpu.memory_space<smem>>
    %96 = vector.broadcast %95 : f32 to vector<8x256xf32>
    %97 = arith.mulf %96, %94 : vector<8x256xf32>
    %98 = arith.addf %92, %97 : vector<8x256xf32>
    %99 = arith.maximumf %93, %94 : vector<8x256xf32>
    %cst_22 = arith.constant 0.000000e+00 : f32
    %100 = vector.broadcast %cst_22 : f32 to vector<8x256xf32>
    %101 = arith.cmpf oge, %98, %100 : vector<8x256xf32>
    %cst_23 = arith.constant 1.000000e-01 : f32
    %102 = vector.broadcast %cst_23 : f32 to vector<8x256xf32>
    %103 = arith.mulf %102, %98 : vector<8x256xf32>
    %104 = arith.select %101, %98, %103 : vector<8x256xi1>, vector<8x256xf32>
    %105 = vector.broadcast %2 : f32 to vector<8x256xf32>
    %106 = arith.mulf %105, %104 : vector<8x256xf32>
    %107 = vector.broadcast %3 : f32 to vector<8x256xf32>
    %108 = arith.addf %106, %107 : vector<8x256xf32>
    %cst_24 = arith.constant 0.000000e+00 : f32
    %109 = vector.broadcast %cst_24 : f32 to vector<8x256xf32>
    %110 = arith.subf %109, %99 : vector<8x256xf32>
    %111 = math.exp %110 : vector<8x256xf32>
    %cst_25 = arith.constant 1.000000e+00 : f32
    %112 = vector.broadcast %cst_25 : f32 to vector<8x256xf32>
    %113 = arith.addf %112, %111 : vector<8x256xf32>
    %114 = tpu.reciprocal %113 {approx = true} : vector<8x256xf32> -> vector<8x256xf32>
    %cst_26 = arith.constant 1.000000e+00 : f32
    %115 = vector.broadcast %cst_26 : f32 to vector<8x256xf32>
    %116 = arith.addf %115, %114 : vector<8x256xf32>
    %117 = arith.mulf %108, %116 : vector<8x256xf32>
    %c0_27 = arith.constant 0 : index
    %c0_28 = arith.constant 0 : index
    %c0_29 = arith.constant 0 : index
    %118 = vector.load %arg4[%c0_27, %c0_28, %c0_29] : memref<1x8x256xf32, #tpu.memory_space<vmem>>, vector<1x8x256xf32>
    %119 = vector.shape_cast %118 : vector<1x8x256xf32> to vector<8x256xf32>
    %120 = vector.shape_cast %117 : vector<8x256xf32> to vector<1x8x256xf32>
    tpu.vector_store %arg4[%c0_27, %c0_28, %c0_29], %120 {strides = array<i32>} : memref<1x8x256xf32, #tpu.memory_space<vmem>>, vector<1x8x256xf32>,
    return
  }
  func.func @transform_0(%arg0: i32) -> i32 {
    %c0_i32 = arith.constant 0 : i32
    %c0_i32_0 = arith.constant 0 : i32
    return %c0_i32 : i32
  }
  func.func @transform_1(%arg0: i32) -> (i32, i32, i32) {
    %c0_i32 = arith.constant 0 : i32
    %c0_i32_0 = arith.constant 0 : i32
    %c0_i32_1 = arith.constant 0 : i32
    return %arg0, %c0_i32, %c0_i32_0 : i32, i32, i32
  }
  func.func @transform_2(%arg0: i32) -> (i32, i32, i32) {
    %c0_i32 = arith.constant 0 : i32
    %c0_i32_0 = arith.constant 0 : i32
    %c0_i32_1 = arith.constant 0 : i32
    return %arg0, %c0_i32, %c0_i32_0 : i32, i32, i32
  }
  func.func @transform_3(%arg0: i32) -> (i32, i32, i32) {
    %c0_i32 = arith.constant 0 : i32
    %c0_i32_0 = arith.constant 0 : i32
    %c0_i32_1 = arith.constant 0 : i32
    return %arg0, %c0_i32, %c0_i32_0 : i32, i32, i32
  }
}

</mosaic_0001>

<bundles_post_ra>
// kernel: tpu_custom_call.1
= control target key start
LH: loop header
LB: loop body
LE: loop exit
PB: predicated region body
PF: predicated region fallthrough
CT: control target
= control target key end

     0   :  { %8 = vsyncpa [#allocation5], 0  ;;  %s1782_s0 = inlined_call_operand.hbm [shape: f32[8], index: 0, kind: input, shape index: {}]   ;;  %s1783_s1 = inlined_call_operand.hbm [shape: f32[2,16,256], index: 1, kind: input, shape index: {}]   ;;  %s1784_s2 = inlined_call_operand.hbm [shape: f32[2,8,256], index: 2, kind: input, shape index: {}]   ;;  %s1785_s3 = inlined_call_operand.hbm [shape: f32[2,8,256], index: 3, kind: output, shape index: {}]  }
   0x1   :  { %9 = vsyncpa [#allocation3], 0 }
   0x2   :  { %11 = vsyncpa [#allocation3 + $0x1], 0 }
   0x3   :  { %12 = vsyncpa [#allocation8], 0 }
   0x4   :  { %14 = vsyncpa [#allocation8 + $0x1], 0 }
   0x5   :  { %15 = vsyncpa [#allocation4], 0 }
   0x6   :  { %17 = vsyncpa [#allocation4 + $0x1], 0  ;;  %s1486_s12 = smov 0   ;;  %s1488_s13 = smov 0  }
   0x7   :  { %s1490_s14 = smov 0   ;;  %s1492_s15 = smov 0  }
   0x8 LB: > { %s1507_s16 = sadd.s32 4294967295, %s1456_s15   ;;  %s1156_s17 = sadd.s32 4294967294, %s1456_s15   ;;  %s1456_s15 = sphi %s1492_s15, %s1807_s15   ;;  %s1452_s14 = sphi %s1490_s14, %s1806_s14   ;;  %s1448_s13 = sphi %s1488_s13, %s1805_s13   ;;  %s1444_s12 = sphi %s1486_s12, %s1804_s12  }
   0x9   : > { %s1511_s18 = sadd.s32 1, %s1456_s15   ;;  %s51_s19 = sadd.s32 1, %s1452_s14 }
   0xa   : > { %s48_s20 = ssub.s32 %s1456_s15, %s1511_s18  ;;  %p58_p0 = scmp.ne.s32.totalorder %s1452_s14, %s1448_s13 }
   0xb   : > { %p49_p1 = scmp.eq.s32.totalorder %s48_s20, 0  ;;  %p59_p2 = scmp.eq.s32.totalorder %s1456_s15, 0 }
   0xc   : > { %p64_p3 = scmp.ne.s32.totalorder %s1448_s13, %s1444_s12  ;;  %p1786_p4 = scmp.eq.s32.totalorder %s1507_s16, 0 }
   0xd   : > { %s1523_s21 = scalar_select %p49_p1, %s1452_s14, %s51_s19  }
   0xe   : > { %p1525_p5 = por %p59_p2, %p58_p0  ;;  %p1531_p6 = por %p1786_p4, %p64_p3 }
   0xf   : > { %p114_p7 = scmp.eq.s32.totalorder %s1507_s16, 1  ;;  %p120_p8 = scmp.eq.s32.totalorder %s1156_s17, 1 }
  0x10   : > { %s1791_s23 = scalar_select %p1531_p6, 1, 0 }
  0x11   : > { %p1157_p9 = scmp.ge.s32.totalorder %s1456_s15, 1  ;;  %p127_p10 = scmp.lt.s32.totalorder %s1456_s15, 3 }
  0x12   : > { %p1538_p11 = por %p114_p7, %p58_p0  ;;  %p1542_p12 = por %p120_p8, %p64_p3 }
  0x13   : > { %p1546_p13 = pnand %p1157_p9, %p127_p10  ;;  %p1261_p4 = scmp.lt.s32.totalorder %s1456_s15, 2 }
  0x14   : > { %s1792_s24 = scalar_select %p1538_p11, 1, 0 }
  0x15   : > { %s1793_s25 = scalar_select %p1542_p12, 1, 0 }
  0x16   : > { %s1794_s26 = scalar_select %p1546_p13, 1, 0 }
  0x17   : > { %p1245_p2 = pneg %p1546_p13  ;;  %s1555_s27 = sand.u32 1, %s1452_s14  }
  0x18   : > { %s1191_s28 = sshll.u32 %s1456_s15, 9  ;;  %p1795_p0 = scmp.eq.s32.totalorder %s1507_s16, 0 }
  0x19   : > { %p1562_p3 = pnand %p1261_p4, %p1525_p5  ;;  %s1160_s30 = sshll.u32 %s1555_s27, 5 }
  0x1a   : > { %p1246_p7 = pnand %p1245_p2, %p1795_p0  ;;  %s1309_s6 = scalar_lea.hbm %s1782_s0, 16 }
  0x1b   : > { %p1310_p8 = scmp.ne.s32.totalorder %s1782_s0, %s1309_s6  ;;  %p1316_p2 = scmp.lt.u32.totalorder %s1309_s6, %s1782_s0 }
  0x1c   : > { %p1311_p9 = pneg %p1246_p7 }
  0x1e   : > { %p1312_p10 = pnand %p1311_p9, %p1310_p8 }
  0x20   : > { %p1313_p1 = pneg %p1312_p10 }
  0x22   : > { %p1318_p4 = pnand %p1316_p2, %p1313_p1 }
  0x24   : > { %1321 = shalt.err (!%p1318_p4)
}
  0x25   : > { %s1458_s11 = smov [#allocation2]   ;;  %s1582_s4 = scalar_lea.hbm %s1783_s1, %s1191_s28 }
  0x26   : > { %1248 = dma.hbm_to_smem (!%p1246_p7), %s1782_s0, 16, %s1458_s11, [#allocation5]  }
  0x27   : > { %s153_s5 = scalar_lea.vmem [#allocation6], %s1160_s30  ;;  %s150_s7 = scalar_lea.sflag [#allocation3], %s1555_s27 }
  0x28   : > { %s160_s6 = sshll.u32 %s153_s5, 4  ;;  %s1322_s8 = scalar_lea.hbm %s1582_s4, 512  ;;  %s1584_s6 = int_to_ptr.vmem [resolvable:$true] %s160_s6 }
  0x29   : > { %p1323_p5 = scmp.ne.s32.totalorder %s1582_s4, %s1322_s8  ;;  %p1324_p1 = pneg %p1562_p3 }
  0x2a   : > { %s1327_s10 = scalar_lea.hbm %s1783_s1, 1024  ;;  %p1328_p8 = scmp.lt.u32.totalorder %s1582_s4, %s1783_s1 }
  0x2b   : > { %p1325_p0 = pnand %p1324_p1, %p1323_p5  ;;  %p1329_p9 = scmp.lt.u32.totalorder %s1327_s10, %s1322_s8 }
  0x2c   : > { %p1331_p2 = scmp.lt.u32.totalorder %s1322_s8, %s1582_s4 }
  0x2d   : > { %p1326_p7 = pneg %p1325_p0  ;;  %p1330_p10 = por %p1329_p9, %p1328_p8 }
  0x2f   : > { %p1332_p4 = por %p1331_p2, %p1330_p10 }
  0x31   : > { %p1333_p12 = pnand %p1332_p4, %p1326_p7 }
  0x33   : > { %1336 = shalt.err (!%p1333_p12)
}
  0x34   : > { %s1337_s30 = scalar_lea.vmem %s1584_s6, 512  ;;  %s1459_s19 = smov [#allocation6]  }
  0x35   : > { %p1338_p5 = scmp.ne.s32.totalorder %s1584_s6, %s1337_s30  ;;  %s1342_s20 = sshll.u32 %s1459_s19, 4  ;;  %s1343_s20 = int_to_ptr.vmem [resolvable:$false] %s1342_s20 }
  0x36   : > { %s1344_s22 = scalar_lea.vmem %s1343_s20, 1024  ;;  %p1345_p6 = scmp.lt.s32.totalorder %s1584_s6, %s1343_s20 }
  0x37   : > { %p1340_p0 = pnand %p1338_p5, %p1324_p1  ;;  %p1346_p8 = scmp.lt.s32.totalorder %s1344_s22, %s1337_s30 }
  0x39   : > { %p1341_p11 = pneg %p1340_p0  ;;  %p1347_p9 = por %p1346_p8, %p1345_p6 }
  0x3b   : > { %p1348_p10 = pnand %p1347_p9, %p1341_p11 }
  0x3d   : > { %1351 = shalt.err (!%p1348_p10)
}
  0x3e   : > { %s1460_s5 = smov 256   ;;  %s1461_s8 = smov 16  }
  0x3f   : > { %1252 = dma.hbm_to_vmem [thread:$0]  (!%p1562_p3), %s1582_s4, 512, %s1584_s6, %s150_s7, %s1460_s5, %s1460_s5, %s1461_s8  }
  0x40   : > { %s1163_s9 = sshll.u32 %s1555_s27, 4  ;;  %s1192_s28 = sshll.u32 %s1456_s15, 8 }
  0x41   : > { %s1619_s17 = scalar_lea.hbm %s1784_s2, %s1192_s28  ;;  %s174_s30 = scalar_lea.vmem [#allocation7], %s1163_s9 }
  0x42   : > { %s182_s19 = sshll.u32 %s174_s30, 4  ;;  %s171_s20 = scalar_lea.sflag [#allocation8], %s1555_s27  ;;  %s183_s19 = int_to_ptr.vmem [resolvable:$true] %s182_s19 }
  0x43   : > { %s1352_s22 = scalar_lea.hbm %s1619_s17, 256  ;;  %s1357_s7 = scalar_lea.hbm %s1784_s2, 512 }
  0x44   : > { %p1353_p6 = scmp.ne.s32.totalorder %s1619_s17, %s1352_s22  ;;  %p1358_p7 = scmp.lt.u32.totalorder %s1619_s17, %s1784_s2 }
  0x45   : > { %p1359_p2 = scmp.lt.u32.totalorder %s1357_s7, %s1352_s22  ;;  %p1361_p5 = scmp.lt.u32.totalorder %s1352_s22, %s1619_s17 }
  0x46   : > { %p1355_p11 = pnand %p1353_p6, %p1324_p1 }
  0x47   : > { %p1360_p4 = por %p1359_p2, %p1358_p7 }
  0x48   : > { %p1356_p12 = pneg %p1355_p11 }
  0x49   : > { %p1362_p0 = por %p1361_p5, %p1360_p4 }
  0x4b   : > { %p1363_p8 = pnand %p1362_p0, %p1356_p12 }
  0x4d   : > { %1366 = shalt.err (!%p1363_p8)
}
  0x4e   : > { %s1367_s27 = scalar_lea.vmem %s183_s19, 256  ;;  %s1462_s9 = smov [#allocation7]  }
  0x4f   : > { %p1368_p9 = scmp.ne.s32.totalorder %s183_s19, %s1367_s27  ;;  %s1372_s28 = sshll.u32 %s1462_s9, 4  ;;  %s1373_s28 = int_to_ptr.vmem [resolvable:$false] %s1372_s28 }
  0x50   : > { %s1374_s10 = scalar_lea.vmem %s1373_s28, 512  ;;  %p1375_p11 = scmp.lt.s32.totalorder %s183_s19, %s1373_s28 }
  0x51   : > { %p1370_p10 = pnand %p1368_p9, %p1324_p1  ;;  %p1376_p13 = scmp.lt.s32.totalorder %s1374_s10, %s1367_s27 }
  0x53   : > { %p1371_p6 = pneg %p1370_p10  ;;  %p1377_p2 = por %p1376_p13, %p1375_p11 }
  0x55   : > { %p1378_p7 = pnand %p1377_p2, %p1371_p6 }
  0x57   : > { %1381 = shalt.err (!%p1378_p7)
}
  0x58   : > { %1255 = dma.hbm_to_vmem [thread:$0]  (!%p1562_p3), %s1619_s17, 256, %s183_s19, %s171_s20  }
  0x59   : > { %p1797_p12 = scmp.ne.s32.totalorder %s1794_s26, 0 }
  0x5a   : > { %p1798_p4 = scmp.eq.s32.totalorder (!%p1797_p12), %s1507_s16, 0 }
  0x5b   : > { %191 = sbr.rel (%p1797_p12) target bundleno = 2424 (0x978), region = 32 }
  0x62   : > { %1427 = dma.done.wait (%p1798_p4), [#allocation5], 16   ;;  %p1799_p1 = pmov %p1798_p4 }
  0x63   : > { %s1648_s11 = sand.u32 1, %s1448_s13   ;;  %p1800_p13 = scmp.ne.s32.totalorder %s1791_s23, 0 }
  0x64   : > { %1429 = vsyncadd (%p1799_p1), [#allocation5], 4294967280  ;;  %s1168_s30 = sshll.u32 %s1648_s11, 5  ;;  %s198_s22 = scalar_lea.sflag [#allocation3], %s1648_s11 }
  0x65   : > { %s201_s29 = scalar_lea.vmem [#allocation6], %s1168_s30 }
  0x66   : > { %1431 = dma.done.wait (%p1800_p13), %s198_s22, 512  }
  0x67   : > { %1433 = vsyncadd (%p1800_p13), %s198_s22, 4294966784  ;;  %s1169_s26 = sshll.u32 %s1648_s11, 4  ;;  %s207_s17 = scalar_lea.sflag [#allocation8], %s1648_s11 }
  0x68   : > { %s210_s19 = scalar_lea.vmem [#allocation7], %s1169_s26 }
  0x69   : > { %1435 = dma.done.wait (%p1800_p13), %s207_s17, 256  }
  0x6a   : > { %1437 = vsyncadd (%p1800_p13), %s207_s17, 4294967040 }
  0x6b   : > { %215 = sfence }
  0x6c   : > { %v1664_v0 = vld [vmem:[%s201_s29 + $0x8] sm:$0xff]  ;;  %v1666_v1 = vld [vmem:[%s201_s29 + $0x18] sm:$0xff]  ;;  %v1668_v2 = vld [vmem:[%s201_s29] sm:$0xff]  ;;  %vm750_vm0 = vcmask 130048   ;;  %v748_v50 = vlaneseq  ;;  %s240_s23 = sld [smem:[#allocation2]]  ;;  %s1171_s20 = sld [smem:[#allocation2 + $0x5]] }
  0x6d   : > { %v250_v3 = vand.u32 4294901760, %v1664_v0  ;;  %v254_v4 = vand.u32 4294901760, %v1666_v1  ;;  %v1672_v5 = vld [vmem:[%s201_s29 + $0x10] sm:$0xff]  ;;  %v252_v6 = vand.u32 4294901760, %v1668_v2  ;;  %v1675_v7 = vld [vmem:[%s210_s19 + $0x8] sm:$0xff]  ;;  %s1182_s4 = sld [smem:[#allocation2 + $0x1]] }
  0x6e   : > { %v1677_v8 = vld [vmem:[%s210_s19] sm:$0xff]  ;;  %v256_v9 = vand.u32 4294901760, %v1672_v5  ;;  %v318_v10 = vand.u32 4294901760, %v1675_v7  ;;  %v1689_v51 = vand.u32 127, %v748_v50  ;;  %s1183_s6 = sld [smem:[#allocation2 + $0x2]]  ;;  %s1184_s7 = sld [smem:[#allocation2 + $0x3]] }
  0x6f   : > { %v324_v11 = vand.u32 4294901760, %v1677_v8  ;;  %v335_v12 = vsub.f32 %v1664_v0, %v250_v3  ;;  %v347_v13 = vsub.f32 %v1666_v1, %v254_v4  ;;  %v341_v14 = vsub.f32 %v1668_v2, %v252_v6  ;;  %s1185_s5 = sld [smem:[#allocation2 + $0x4]]  ;;  %s1172_s8 = sld [smem:[#allocation2 + $0x6]] }
  0x70   : > { %v1194_v15 = vpack.c.bf16 %v254_v4, %v250_v3  ;;  %v353_v16 = vsub.f32 %v1672_v5, %v256_v9  ;;  %419 = vmatprep.mubr.f32.mxu0 %v318_v10  ;;  %v319_v17 = vsub.f32 %v1675_v7, %v318_v10  ;;  %v1196_v19 = vpack.c.bf16 %v256_v9, %v252_v6  ;;  %s1173_s27 = sld [smem:[#allocation2 + $0x7]]  ;;  %s1193_s9 = sshll.u32 %s1507_s16, 8 }
  0x71   : > { %v325_v18 = vsub.f32 %v1677_v8, %v324_v11  ;;  %v336_v20 = vand.u32 4294901760, %v335_v12  ;;  %v348_v21 = vand.u32 4294901760, %v347_v13  ;;  %v342_v22 = vand.u32 4294901760, %v341_v14  ;;  %s238_s28 = scalar_lea.vmem [#allocation9], %s1169_s26  ;;  %s1738_s29 = scalar_lea.hbm %s1785_s3, %s1193_s9 }
  0x72   : > { %1195 = vmatprep.subr.bf16.mxu1 %v1194_v15  ;;  %v354_v23 = vand.u32 4294901760, %v353_v16  ;;  %v320_v24 = vand.u32 4294901760, %v319_v17  ;;  %v1202_v39 = vpack.c.bf16 %v347_v13, %v335_v12  ;;  %v1204_v41 = vpack.c.bf16 %v353_v16, %v341_v14  ;;  %s1051_s10 = sshll.u32 %s238_s28, 4  ;;  %s1037_s16 = scalar_lea.sflag [#allocation4], %s1648_s11  ;;  %s1740_s10 = int_to_ptr.vmem [resolvable:$true] %s1051_s10 }
  0x73   : > { %v326_v25 = vand.u32 4294901760, %v325_v18  ;;  %1197 = vmatpush1.bf16.xpose.msra.mxu1 %v1196_v19  ;;  %v337_v26 = vsub.f32 %v335_v12, %v336_v20  ;;  %v349_v27 = vsub.f32 %v347_v13, %v348_v21  ;;  %v343_v28 = vsub.f32 %v341_v14, %v342_v22  ;;  %s1382_s17 = scalar_lea.vmem %s1740_s10, 256  ;;  %p1801_p5 = scmp.ne.s32.totalorder %s1792_s24, 0 }
  0x74   : > { %v355_v29 = vsub.f32 %v353_v16, %v354_v23  ;;  %v321_v30 = vsub.f32 %v319_v17, %v320_v24  ;;  %v1210_v42 = vpack.c.bf16 %v348_v21, %v336_v20  ;;  %v1212_v43 = vpack.c.bf16 %v354_v23, %v342_v22  ;;  %p1383_p3 = scmp.ne.s32.totalorder %s1740_s10, %s1382_s17  ;;  %s1465_s26 = smov [#allocation9]  }
  0x75   : > { %v327_v31 = vsub.f32 %v325_v18, %v326_v25  ;;  %v338_v32 = vand.u32 4294901760, %v337_v26  ;;  %v350_v33 = vand.u32 4294901760, %v349_v27  ;;  %v344_v34 = vand.u32 4294901760, %v343_v28  ;;  %s1386_s19 = sshll.u32 %s1465_s26, 4  ;;  %s1387_s19 = int_to_ptr.vmem [resolvable:$false] %s1386_s19 }
  0x76   : > { %v356_v35 = vand.u32 4294901760, %v355_v29  ;;  %v322_v36 = vand.u32 4294901760, %v321_v30  ;;  %v848_v20 = vpack.c.bf16 %v1672_v5, %v1668_v2  ;;  %p1384_p0 = pnand %p1383_p3, %p1801_p5  ;;  %p1389_p9 = scmp.lt.s32.totalorder %s1740_s10, %s1387_s19 }
  0x77   : > { %v328_v37 = vand.u32 4294901760, %v327_v31  ;;  %v1198_v38 = vpack.c.bf16 %v350_v33, %v338_v32  ;;  %v1463_v31 = vmov 0  }
  0x78   : > { %v1200_v40 = vpack.c.bf16 %v356_v35, %v344_v34  ;;  %323 = vmatprep.mubr.f32.mxu1 %v322_v36  ;;  %v850_v23 = vunpack.c.l.bf16 %v848_v20  ;;  %p1385_p8 = pneg %p1384_p0 }
  0x79   : > { %1199 = vmatprep.subr.bf16.mxu0 %v1198_v38 }
  0x7a   : > { %329 = vmatmul.mubr.f32.vlgmr.msra.gmra.mrb[0].mxu1 %v328_v37  ;;  %1201 = vmatpush1.bf16.xpose.msra.mxu0 %v1200_v40  ;;  %v854_v27 = vsub.f32 %v1668_v2, %v850_v23 }
  0x7b   : > { %1203 = vmatprep.subr.bf16.mxu0 %v1202_v39  ;;  %898 = vmatprep.mubr.bf16.mxu1 %v1463_v31 }
  0x81   : > { %421 = vmatmul.mubr.f32.vlgmr.msra.gmra.mrb[0].mxu0 %v324_v11 }
  0x82   : > { %1205 = vmatpush1.bf16.xpose.msra.mxu0 %v1204_v41  ;;  %500 = vmatprep.mubr.f32.mxu0 %v319_v17 }
  0x83   : > { %1207 = vmatprep.subr.bf16.mxu0 %v1194_v15 }
  0x89   : > { %503 = vmatmul.mubr.f32.vlgmr.msra.gmra.mrb[0].mxu0 %v325_v18 }
  0x8a   : > { %1209 = vmatpush1.bf16.xpose.msra.mxu0 %v1196_v19  ;;  %579 = vmatprep.mubr.f32.mxu0 %v320_v24  ;;  %v852_v24 = vunpack.c.h.bf16 %v848_v20 }
  0x8b   : > { %1211 = vmatprep.subr.bf16.mxu0 %v1210_v42 }
  0x8c   : > { %v856_v28 = vsub.f32 %v1672_v5, %v852_v24 }
  0x8e   : > { %v858_v30 = vpack.c.bf16 %v856_v28, %v854_v27 }
  0x91   : > { %583 = vmatmul.mubr.f32.vlgmr.msra.gmra.mrb[0].mxu0 %v326_v25 }
  0x92   : > { %1213 = vmatpush1.bf16.xpose.msra.mxu0 %v1212_v43  ;;  %665 = vmatprep.mubr.f32.mxu0 %v318_v10 }
  0x93   : > { %1215 = vmatprep.subr.bf16.mxu0 %v1194_v15 }
  0x99   : > { %667 = vmatmul.mubr.f32.vlgmr.msra.gmra.mrb[0].mxu0 %v324_v11 }
  0x9a   : > { %1217 = vmatpush1.bf16.xpose.msra.mxu0 %v1196_v19  ;;  %741 = vmatprep.mubr.f32.mxu0 %v318_v10  ;;  %v849_v19 = vpack.c.bf16 %v1666_v1, %v1664_v0 }
  0x9c   : > { %v851_v21 = vunpack.c.l.bf16 %v849_v19  ;;  %v853_v22 = vunpack.c.h.bf16 %v849_v19 }
  0x9e   : > { %v855_v25 = vsub.f32 %v1664_v0, %v851_v21  ;;  %v857_v26 = vsub.f32 %v1666_v1, %v853_v22  ;;  %v1464_v0 = vmov 0.0   ;;  %v985_v22 = vstv %s1183_s6 }
  0xa0   : > { %v859_v29 = vpack.c.bf16 %v857_v26, %v855_v25 }
  0xa1   : > { %743 = vmatmul.mubr.f32.vlgmr.msra.gmra.mrb[0].mxu0 %v324_v11 }
  0xa2   : > { %866 = vmatprep.subr.bf16.mxu1 %v859_v29 }
  0xa3   : > { %867 = vmatpush1.bf16.msra.mxu1 %v858_v30 }
  0xa4   : > { %919 = vmatprep.subr.bf16.mxu1 %v849_v19 }
 0x14d   : > { %v330_v44 = vpop.f32.mrb[0].mxu1 }
 0x14e   : > { %v332_v45 = vpop.f32.mrb[1].mxu1 }
 0x174   : > { %v744_v46 = vpop.f32.mrb[0].mxu0 }
 0x175   : > { %v1218_v47 = vadd.f32 %v744_v46, %v330_v44  ;;  %v746_v48 = vpop.f32.mrb[1].mxu0 }
 0x177   : > { %v751_v49 = vsel %vm750_vm0, %v1218_v47, -inf }
 0x178   : > { %752 = vmax.xlane.f32.xlu0 %v751_v49 }
 0x205   : > { %v753_v52 = vpop.xlane.xlu0 %752 }
 0x206   : > { %vm754_vm1 = vcmp.eq.f32.partialorder %v1218_v47, %v753_v52 }
 0x207   : > { %v755_v53 = vsel %vm754_vm1, %v1689_v51, 16 }
 0x208   : > { %v756_v54 = vsel %vm750_vm0, %v755_v53, 2147483647 }
 0x209   : > { %v758_v55 = vshra.s32 %v756_v54, 16  ;;  %v757_v57 = vand.u32 65535, %v756_v54 }
 0x20b   : > { %v760_v56 = vcvt.s32.f32 %v758_v55  ;;  %v759_v59 = vcvt.s32.f32 %v757_v57 }
 0x20d   : > { %761 = vmin.xlane.f32.xlu0 %v760_v56 }
 0x29a   : > { %v762_v58 = vpop.xlane.xlu0 %761 }
 0x29b   : > { %vm763_vm2 = vcmp.eq.f32.partialorder %v760_v56, %v762_v58  ;;  %v768_v61 = vcvt.f32.s32 %v762_v58 }
 0x29c   : > { %v764_v60 = vsel %vm763_vm2, %v759_v59, inf }
 0x29d   : > { %765 = vmin.xlane.f32.xlu1 %v764_v60  ;;  %v769_v63 = vshll.u32 %v768_v61, 16 }
 0x32a   : > { %v766_v62 = vpop.xlane.xlu1 %765 }
 0x32b   : > { %v767_v3 = vcvt.f32.s32 %v766_v62 }
 0x32d   : > { %v770_v4 = vadd.s32 %v769_v63, %v767_v3 }
 0x32f   : > { %vm771_vm3 = vcmp.eq.s32.totalorder %v1689_v51, %v770_v4 }
 0x330   : > { %v774_v6 = vsel %vm771_vm3, -inf, %v1218_v47  ;;  %v1174_v1 = vsel %vm771_vm3, 1.0, %v1464_v0 }
 0x331   : > { %v775_v9 = vsel %vm750_vm0, %v774_v6, -inf }
 0x332   : > { %776 = vmax.xlane.f32.xlu1 %v775_v9 }
 0x3bf   : > { %v777_v10 = vpop.xlane.xlu1 %776 }
 0x3c0   : > { %vm778_vm4 = vcmp.eq.f32.partialorder %v774_v6, %v777_v10 }
 0x3c1   : > { %v779_v11 = vsel %vm778_vm4, %v1689_v51, 16 }
 0x3c2   : > { %v780_v12 = vsel %vm750_vm0, %v779_v11, 2147483647 }
 0x3c3   : > { %v782_v13 = vshra.s32 %v780_v12, 16  ;;  %v781_v15 = vand.u32 65535, %v780_v12 }
 0x3c5   : > { %v784_v14 = vcvt.s32.f32 %v782_v13  ;;  %v783_v17 = vcvt.s32.f32 %v781_v15  ;;  %v972_v15 = vstv %s240_s23  ;;  %s1388_s23 = scalar_lea.vmem %s1387_s19, 512 }
 0x3c6   : > { %p1390_p10 = scmp.lt.s32.totalorder %s1388_s23, %s1382_s17 }
 0x3c7   : > { %785 = vmin.xlane.f32.xlu0 %v784_v14 }
 0x3c8   : > { %p1391_p6 = por %p1390_p10, %p1389_p9 }
 0x3ca   : > { %p1392_p11 = pnand %p1391_p6, %p1385_p8 }
 0x454   : > { %v786_v16 = vpop.xlane.xlu0 %785 }
 0x455   : > { %vm787_vm5 = vcmp.eq.f32.partialorder %v784_v14, %v786_v16  ;;  %v792_v32 = vcvt.f32.s32 %v786_v16  ;;  %v975_v16 = vstv %s1171_s20 }
 0x456   : > { %v788_v18 = vsel %vm787_vm5, %v783_v17, inf  ;;  %v974_v17 = vmul.f32 %v972_v15, %v1675_v7 }
 0x457   : > { %789 = vmin.xlane.f32.xlu1 %v788_v18  ;;  %v793_v34 = vshll.u32 %v792_v32, 16  ;;  %v979_v18 = vstv %s1182_s4 }
 0x458   : > { %v977_v21 = vadd.f32 %v975_v16, %v974_v17 }
 0x4e4   : > { %v790_v33 = vpop.xlane.xlu1 %789 }
 0x4e5   : > { %v791_v35 = vcvt.f32.s32 %v790_v33 }
 0x4e7   : > { %v794_v36 = vadd.s32 %v793_v34, %v791_v35  ;;  %v993_v34 = vstv %s1184_s7 }
 0x4e9   : > { %vm795_vm6 = vcmp.eq.s32.totalorder %v1689_v51, %v794_v36  ;;  %v1001_v36 = vstv %s1185_s5 }
 0x4ea   : > { %v798_v2 = vsel %vm795_vm6, -inf, %v774_v6  ;;  %v1175_v5 = vsel %vm795_vm6, 1.0, %v1464_v0 }
 0x4eb   : > { %v799_v37 = vsel %vm750_vm0, %v798_v2, -inf  ;;  %v846_v38 = vpack.c.bf16 %v1175_v5, %v1174_v1 }
 0x4ec   : > { %800 = vmax.xlane.f32.xlu0 %v799_v37 }
 0x4ed   : > { %1178 = vmatmul.mubr.msk.bf16.vlgmr.msra.gmra.mrb[4].mxu1 %vm750_vm0, %v846_v38 }
 0x4ee   : > { %920 = vmatpush1.bf16.msra.mxu1 %v848_v20  ;;  %908 = vmatprep.mubr.bf16.mxu1 %v1463_v31 }
 0x579   : > { %v801_v39 = vpop.xlane.xlu0 %800 }
 0x57a   : > { %vm802_vm7 = vcmp.eq.f32.partialorder %v798_v2, %v801_v39 }
 0x57b   : > { %v803_v40 = vsel %vm802_vm7, %v1689_v51, 16 }
 0x57c   : > { %v804_v41 = vsel %vm750_vm0, %v803_v40, 2147483647 }
 0x57d   : > { %v806_v42 = vshra.s32 %v804_v41, 16  ;;  %v805_v44 = vand.u32 65535, %v804_v41 }
 0x57f   : > { %v808_v43 = vcvt.s32.f32 %v806_v42  ;;  %v807_v46 = vcvt.s32.f32 %v805_v44 }
 0x581   : > { %809 = vmin.xlane.f32.xlu1 %v808_v43 }
 0x60e   : > { %v810_v45 = vpop.xlane.xlu1 %809 }
 0x60f   : > { %vm811_vm8 = vcmp.eq.f32.partialorder %v808_v43, %v810_v45  ;;  %v816_v48 = vcvt.f32.s32 %v810_v45 }
 0x610   : > { %v812_v47 = vsel %vm811_vm8, %v807_v46, inf }
 0x611   : > { %813 = vmin.xlane.f32.xlu0 %v812_v47  ;;  %v817_v50 = vshll.u32 %v816_v48, 16 }
 0x69e   : > { %v814_v49 = vpop.xlane.xlu0 %813 }
 0x69f   : > { %v815_v52 = vcvt.f32.s32 %v814_v49 }
 0x6a1   : > { %v818_v53 = vadd.s32 %v817_v50, %v815_v52 }
 0x6a3   : > { %vm819_vm9 = vcmp.eq.s32.totalorder %v1689_v51, %v818_v53 }
 0x6a4   : > { %v822_v54 = vsel %vm819_vm9, -inf, %v798_v2  ;;  %v1176_v12 = vsel %vm819_vm9, 1.0, %v1464_v0 }
 0x6a5   : > { %v823_v55 = vsel %vm750_vm0, %v822_v54, -inf }
 0x6a6   : > { %824 = vmax.xlane.f32.xlu1 %v823_v55 }
 0x733   : > { %v825_v56 = vpop.xlane.xlu1 %824 }
 0x734   : > { %vm826_vm10 = vcmp.eq.f32.partialorder %v822_v54, %v825_v56 }
 0x735   : > { %v827_v57 = vsel %vm826_vm10, %v1689_v51, 16 }
 0x736   : > { %v828_v58 = vsel %vm750_vm0, %v827_v57, 2147483647 }
 0x737   : > { %v830_v59 = vshra.s32 %v828_v58, 16  ;;  %v829_v61 = vand.u32 65535, %v828_v58 }
 0x739   : > { %v832_v60 = vcvt.s32.f32 %v830_v59  ;;  %v831_v63 = vcvt.s32.f32 %v829_v61 }
 0x73b   : > { %833 = vmin.xlane.f32.xlu0 %v832_v60 }
 0x7c8   : > { %v834_v62 = vpop.xlane.xlu0 %833 }
 0x7c9   : > { %vm835_vm11 = vcmp.eq.f32.partialorder %v832_v60, %v834_v62  ;;  %v840_v4 = vcvt.f32.s32 %v834_v62  ;;  %v1014_v60 = vstv %s1172_s8 }
 0x7ca   : > { %v836_v3 = vsel %vm835_vm11, %v831_v63, inf }
 0x7cb   : > { %837 = vmin.xlane.f32.xlu1 %v836_v3  ;;  %v841_v9 = vshll.u32 %v840_v4, 16  ;;  %v1017_v3 = vstv %s1173_s27 }
 0x858   : > { %v838_v6 = vpop.xlane.xlu1 %837 }
 0x859   : > { %v839_v10 = vcvt.f32.s32 %v838_v6 }
 0x85b   : > { %v842_v11 = vadd.s32 %v841_v9, %v839_v10 }
 0x85d   : > { %vm843_vm12 = vcmp.eq.s32.totalorder %v1689_v51, %v842_v11  ;;  %v973_v51 = vmul.f32 %v972_v15, %v1677_v8 }
 0x85e   : > { %v1177_v13 = vsel %vm843_vm12, 1.0, %v1464_v0 }
 0x85f   : > { %v847_v14 = vpack.c.bf16 %v1177_v13, %v1176_v12  ;;  %v976_v19 = vadd.f32 %v975_v16, %v973_v51 }
 0x861   : > { %1179 = vmatmul.mubr.msk.bf16.gmra.mrb[8].mxu1 %vm750_vm0, %v847_v14 }
 0x862   : > { %951 = vmatprep.mubr.bf16.mxu1 %v1463_v31 }
 0x869   : > { %1180 = vmatmul.mubr.msk.bf16.vlgmr.msra.gmra.mrb[4].mxu1 %vm750_vm0, %v846_v38 }
 0x86a   : > { %961 = vmatprep.mubr.bf16.mxu1 %v1463_v31 }
 0x871   : > { %1181 = vmatmul.mubr.msk.bf16.gmra.mrb[8].mxu1 %vm750_vm0, %v847_v14 }
 0x93c   : > { %v953_v20 = vpop.f32.mrb[4].mxu1 }
 0x93d   : > { %v980_v23 = vmul.f32 %v979_v18, %v953_v20  ;;  %v955_v24 = vpop.f32.mrb[5].mxu1 }
 0x93e   : > { %v981_v25 = vmul.f32 %v979_v18, %v955_v24  ;;  %v957_v26 = vpop.f32.mrb[6].mxu1 }
 0x93f   : > { %v982_v27 = vadd.f32 %v980_v23, %v976_v19  ;;  %v986_v28 = vmul.f32 %v985_v22, %v957_v26  ;;  %v990_v29 = vmax.f32 %v953_v20, %v957_v26  ;;  %v959_v30 = vpop.f32.mrb[7].mxu1 }
 0x940   : > { %v983_v31 = vadd.f32 %v981_v25, %v977_v21  ;;  %v987_v8 = vmul.f32 %v985_v22, %v959_v30  ;;  %v991_v32 = vmax.f32 %v955_v24, %v959_v30 }
 0x941   : > { %v988_v33 = vadd.f32 %v986_v28, %v982_v27 }
 0x942   : > { %v989_v7 = vadd.f32 %v987_v8, %v983_v31 }
 0x944   : > { %v963_v35 = vpop.f32.mrb[8].mxu1 }
 0x945   : > { %v994_v0 = vmul.f32 %v993_v34, %v963_v35  ;;  %v998_v1 = vmax.f32 %v990_v29, %v963_v35  ;;  %v965_v2 = vpop.f32.mrb[9].mxu1 }
 0x946   : > { %v995_v5 = vmul.f32 %v993_v34, %v965_v2  ;;  %v999_v37 = vmax.f32 %v991_v32, %v965_v2  ;;  %v967_v38 = vpop.f32.mrb[10].mxu1 }
 0x947   : > { %v996_v39 = vadd.f32 %v994_v0, %v988_v33  ;;  %v1006_v40 = vmax.f32 %v998_v1, %v967_v38  ;;  %v969_v41 = vpop.f32.mrb[11].mxu1  ;;  %v1002_v42 = vmul.f32 %v1001_v36, %v967_v38 }
 0x948   : > { %v997_v43 = vadd.f32 %v995_v5, %v989_v7  ;;  %v1003_v44 = vmul.f32 %v1001_v36, %v969_v41  ;;  %v1007_v45 = vmax.f32 %v999_v37, %v969_v41 }
 0x949   : > { %v1020_v46 = vsub.f32 0.0, %v1006_v40  ;;  %v1004_v47 = vadd.f32 %v1002_v42, %v996_v39 }
 0x94a   : > { %v1005_v48 = vadd.f32 %v1003_v44, %v997_v43  ;;  %v1021_v49 = vsub.f32 0.0, %v1007_v45 }
 0x94b   : > { %v1022_v50 = vmul.f32 1.442695, %v1020_v46  ;;  %v1010_v57 = vmul.f32 0.1, %v1004_v47  ;;  %vm1008_vm13 = vcmp.ge.f32.partialorder %v1004_v47, 0.0 }
 0x94c   : > { %v1024_v52 = vmul.f32 1.442695, %v1021_v49  ;;  %v1011_v58 = vmul.f32 0.1, %v1005_v48  ;;  %vm1009_vm14 = vcmp.ge.f32.partialorder %v1005_v48, 0.0 }
 0x94d   : > { %1301 = vpow2.f32 %v1022_v50  ;;  %v1012_v59 = vsel %vm1008_vm13, %v1004_v47, %v1010_v57 }
 0x94e   : > { %1303 = vpow2.f32 %v1024_v52  ;;  %v1013_v61 = vsel %vm1009_vm14, %v1005_v48, %v1011_v58  ;;  %v1015_v62 = vmul.f32 %v1014_v60, %v1012_v59 }
 0x94f   : > { %v1016_v63 = vmul.f32 %v1014_v60, %v1013_v61 }
 0x950   : > { %v1018_v10 = vadd.f32 %v1017_v3, %v1015_v62 }
 0x951   : > { %v1019_v12 = vadd.f32 %v1017_v3, %v1016_v63 }
 0x957   : > { %v1302_v53 = vpop.eup %1301 }
 0x958   : > { %v1304_v54 = vpop.eup %1303  ;;  %v1026_v55 = vadd.f32 1.0, %v1302_v53 }
 0x959   : > { %v1027_v56 = vadd.f32 1.0, %v1304_v54 }
 0x95a   : > { %1305 = vrcp.f32 %v1026_v55 }
 0x95b   : > { %1307 = vrcp.f32 %v1027_v56 }
 0x964   : > { %v1306_v4 = vpop.eup %1305 }
 0x965   : > { %v1308_v6 = vpop.eup %1307  ;;  %v1030_v9 = vadd.f32 1.0, %v1306_v4 }
 0x966   : > { %v1031_v11 = vadd.f32 1.0, %v1308_v6 }
 0x967   : > { %v1032_v13 = vmul.f32 %v1030_v9, %v1018_v10 }
 0x968   : > { %v1033_v14 = vmul.f32 %v1031_v11, %v1019_v12 }
 0x969   : > { %1034 = vst [vmem:[%s238_s28] sm:$0xff] %v1032_v13 }
 0x96a   : > { %1035 = vst [vmem:[%s238_s28 + $0x8] sm:$0xff] %v1033_v14 }
 0x96b   : > { %1395 = shalt.err (!%p1392_p11)
}
 0x96c   : > { %s1396_s11 = scalar_lea.hbm %s1738_s29, 256  ;;  %s1400_s6 = scalar_lea.hbm %s1785_s3, 512 }
 0x96d   : > { %p1397_p2 = scmp.ne.s32.totalorder %s1738_s29, %s1396_s11  ;;  %p1401_p4 = scmp.lt.u32.totalorder %s1738_s29, %s1785_s3 }
 0x96e   : > { %p1402_p1 = scmp.lt.u32.totalorder %s1400_s6, %s1396_s11  ;;  %p1404_p3 = scmp.lt.u32.totalorder %s1396_s11, %s1738_s29 }
 0x96f   : > { %p1398_p7 = pnand %p1397_p2, %p1801_p5 }
 0x970   : > { %p1403_p13 = por %p1402_p1, %p1401_p4 }
 0x971   : > { %p1399_p12 = pneg %p1398_p7 }
 0x972   : > { %p1405_p0 = por %p1404_p3, %p1403_p13 }
 0x974   : > { %p1406_p8 = pnand %p1405_p0, %p1399_p12 }
 0x976   : > { %1409 = shalt.err (!%p1406_p8)
}
 0x977   : > { %1243 = dma.vmem_to_hbm [thread:$0]  (%p1801_p5), %s1740_s10, 256, %s1738_s29, %s1037_s16  }
 0x978 PF: > { %s1063_s8 = sand.u32 1, %s1444_s12   ;;  %p1802_p9 = scmp.ne.s32.totalorder %s1793_s25, 0 }
 0x979   : > { %p1803_p10 = scmp.ge.s32.totalorder %s1456_s15, 2  ;;  %s1064_s27 = scalar_lea.sflag [#allocation4], %s1063_s8 }
 0x97b   : > { %p1257_p6 = pnand %p1803_p10, %p1802_p9 }
 0x97d   : > { %1439 = dma.done.wait (!%p1257_p6), %s1064_s27, 256  }
 0x97e   : > { %1441 = vsyncadd (!%p1257_p6), %s1064_s27, 4294967040  ;;  %p20_p11 = scmp.ge.s32.totalorder %s1511_s18, 4   ;;  %s1804_s12 = smov %s1448_s13 }
 0x97f   : > { %s1805_s13 = smov %s1452_s14  ;;  %s1806_s14 = smov %s1523_s21 }
 0x980   : > { %s1807_s15 = smov %s1511_s18  ;;  %22 = sbr.rel (!%p20_p11) target bundleno = 8 (0x8), region = 95 }
 0x987   :  { %1069 = vsyncpa [#allocation3], 1 }
 0x988   :  { %1071 = vsyncpa [#allocation3 + $0x1], 1 }
 0x989   :  { %1072 = vsyncpa [#allocation8], 1 }
 0x98a   :  { %1074 = vsyncpa [#allocation8 + $0x1], 1 }
 0x98b   :  { %1075 = vsyncpa [#allocation4], 1 }
 0x98c   :  { %1077 = vsyncpa [#allocation4 + $0x1], 1 }
 0x98d   :  { %1078 = vsyncpa [#allocation5], 1 }
 0x98e   :  { %1080 = vsyncpa [#allocation5 + $0x1], 1 }

</bundles_post_ra>
